<compile_context>
chip_gen: v6e
topology: v6e:2x2x1
jax: 0.10.0
libtpu: 0.0.40
codegen_flags: <defaults>
</compile_context>

<pallas_src>
import math

import jax
import jax.numpy as jnp
from jax.experimental import pallas as pl
from jax.experimental.pallas import tpu as pltpu


# ----------------------------------------------------------------------------
# 1) ImageEncoder preprocessing kernel (uint8 scale + ImageNet normalize)
# ----------------------------------------------------------------------------

_IMAGENET_MEAN = (0.485, 0.456, 0.406)
_IMAGENET_STD = (0.229, 0.224, 0.225)


def _image_preprocess_kernel(img_ref, a_ref, bias_ref, out_ref):
    # img_ref: (rows_tile, lane_tile) raw input (uint8 or float) — the cast and
    # scale happen here so the HBM read stays 1 B/elem for uint8 inputs.
    # a_ref / bias_ref: (rows_tile, 1) per-row scale / bias (lane broadcast).
    x = img_ref[...].astype(jnp.float32)
    out_ref[...] = (x * a_ref[...] + bias_ref[...]).astype(out_ref.dtype)


def _largest_divisor_tile(total, target, align):
    """Largest multiple of `align` that divides `total` and is <= target.

    Falls back to the full extent (always legal: block dim == array dim).
    """
    hi = min(target, total)
    for cand in range((hi // align) * align, 0, -align):
        if total % cand == 0:
            return cand
    return total


def image_encoder_preprocess(images, *, out_dtype=jnp.float32,
                             lane_tile_target=2048, row_tile_target=32):
    """images: (B, 3, H, W) uint8 or float -> normalized (B, 3, H, W) out_dtype.

    Matches ImageEncoder.forward preprocessing: uint8 inputs are scaled by
    1/255, then per-channel ImageNet mean/std normalization is applied.
    """
    B, C, Hh, Ww = images.shape
    assert C == len(_IMAGENET_MEAN), "ImageNet normalization expects 3 channels"
    R, L = B * C, Hh * Ww

    is_uint8 = images.dtype == jnp.uint8
    scale = 1.0 / 255.0 if is_uint8 else 1.0
    # Raw uint8 goes straight into the kernel (no wrapper-side f32 copy).
    imgs = (images if is_uint8 else images.astype(jnp.float32)).reshape(R, L)

    mean = jnp.asarray(_IMAGENET_MEAN, jnp.float32)
    inv_std = 1.0 / jnp.asarray(_IMAGENET_STD, jnp.float32)
    # Fold /255 and the normalization into one multiply-add: x*a + bias.
    a_row = jnp.tile(inv_std * jnp.float32(scale), B).reshape(R, 1)
    bias_row = jnp.tile(-mean * inv_std, B).reshape(R, 1)

    lane_tile = _largest_divisor_tile(L, lane_tile_target, 128)
    row_tile = _largest_divisor_tile(R, row_tile_target, 8)
    grid = (R // row_tile, L // lane_tile)

    out = pl.pallas_call(
        _image_preprocess_kernel,
        out_shape=jax.ShapeDtypeStruct((R, L), out_dtype),
        grid=grid,
        in_specs=[
            pl.BlockSpec((row_tile, lane_tile), lambda r, l: (r, l)),
            pl.BlockSpec((row_tile, 1), lambda r, l: (r, 0)),
            pl.BlockSpec((row_tile, 1), lambda r, l: (r, 0)),
        ],
        out_specs=pl.BlockSpec((row_tile, lane_tile), lambda r, l: (r, l)),
        compiler_params=pltpu.CompilerParams(
            dimension_semantics=("parallel", "parallel")),
    )(imgs, a_row, bias_row)
    return out.reshape(B, C, Hh, Ww)


def image_encoder_preprocess_reference(images):
    x = images.astype(jnp.float32)
    if images.dtype == jnp.uint8:
        x = x / 255.0
    mean = jnp.asarray(_IMAGENET_MEAN, jnp.float32).reshape(1, 3, 1, 1)
    std = jnp.asarray(_IMAGENET_STD, jnp.float32).reshape(1, 3, 1, 1)
    return (x - mean) / std


# ----------------------------------------------------------------------------
# 2) AttentionLSTM recurrence — single-invocation, fully unrolled
# ----------------------------------------------------------------------------

def _attn_lstm_kernel(x2d_ref, a_ref, wx_ref, whw_ref, b_ref, hn_ref):
    """x2d_ref: (T*N, D) t-major, MXU dtype.
    a_ref: (N, P, H) f32 projected spatial features.
    wx_ref: (D, 4H) MXU dtype.     whw_ref: (2H, 4H) fused [Wh; Wattn].
    b_ref: (1, 4H) f32.            hn_ref: (N, T*H) f32 output slab.
    """
    N, P, H = a_ref.shape
    T = x2d_ref.shape[0] // N

    A = a_ref[...]                        # loaded once, stays resident
    Whw = whw_ref[...]                    # fused [Wh; Wattn] (2H, 4H)
    inv_sqrt_h = jnp.float32(1.0 / math.sqrt(H))

    # --- hoisted, loop-invariant work (off the recurrence critical path) ----
    # One well-shaped (T*N, D) x (D, 4H) MXU matmul for the x contribution of
    # every timestep; the bias broadcast is folded in here exactly once.
    gxb = jnp.dot(x2d_ref[...], wx_ref[...],
                  preferred_element_type=jnp.float32) + b_ref[...]   # (T*N, 4H)

    # h0 = c0 = spatial mean of A.
    h = jnp.mean(A, axis=1)               # (N, H) f32
    c = h

    use_mxu_attn = H >= 128                # MXU path at production H
    per_step_store = (H % 128) == 0        # unmasked lane-dense per-step store

    hs = []
    # Fully unrolled: T is static & tiny, h/c live in vregs, no per-step grid
    # or pipeline overhead, weights touched exactly once.
    for t in range(T):
        # --- scaled dot-product attention over the P spatial positions ------
        q = h * inv_sqrt_h                                         # fold 1/sqrt(H)
        if use_mxu_attn:
            scores = jnp.einsum('nh,nph->np', q, A,
                                preferred_element_type=jnp.float32)
        else:
            scores = jnp.sum(q[:, None, :] * A, axis=2)            # (N, P)
        scores = scores - jnp.max(scores, axis=1, keepdims=True)
        e = jnp.exp(scores)
        denom = jnp.sum(e, axis=1, keepdims=True)
        w_att = e * pl.reciprocal(denom, approx=True)              # EUP vrcp
        if use_mxu_attn:
            attn = jnp.einsum('np,nph->nh', w_att, A,
                              preferred_element_type=jnp.float32)
        else:
            attn = jnp.sum(w_att[:, :, None] * A, axis=1)          # (N, H)

        # --- gate pre-activations: only the recurrent part stays in-loop ----
        z = jnp.concatenate([h, attn], axis=1).astype(whw_ref.dtype)   # (N, 2H)
        a_gates = (jnp.dot(z, Whw, preferred_element_type=jnp.float32)
                   + gxb[t * N:(t + 1) * N, :])                    # (N, 4H) f32

        # --- gates: batched transcendentals (1 sigmoid over i|f|o, 1 tanh) --
        sig = jax.nn.sigmoid(a_gates[:, 0:3 * H])
        i = sig[:, 0 * H:1 * H]
        f = sig[:, 1 * H:2 * H]
        o = sig[:, 2 * H:3 * H]
        g = jnp.tanh(a_gates[:, 3 * H:4 * H])

        c = f * c + i * g
        h = o * jnp.tanh(c)

        if per_step_store:
            # H is a multiple of 128: per-step store is already unmasked and
            # lane-dense; keeps only h/c live (bounded vreg live ranges).
            hn_ref[:, t * H:(t + 1) * H] = h.astype(hn_ref.dtype)
        else:
            hs.append(h)

    if not per_step_store:
        # H < 128: single lane-dense (N, T*H) writeback instead of T masked
        # sub-128-lane stores.
        hn_ref[...] = jnp.concatenate(hs, axis=1).astype(hn_ref.dtype)


def attention_lstm_forward(x, A, Wx, Wh, Wattn, b, *, mxu_dtype=jnp.float32):
    """x: (N,T,D), A: (N,H,4,4) -> hn: (N,T,H) float32.

    mxu_dtype: dtype of the MXU operands (weights and LHS). bf16 runs at full
    MXU rate on v5e/v6e/v7x and halves operand bytes; all elementwise softmax
    and gate math stays float32 regardless.
    """
    N, T, D = x.shape
    _, H, Ha, Wa = A.shape
    P = Ha * Wa

    # (N, H, 4, 4) -> (N, P, H): spatial positions on sublanes, H on lanes.
    A_flat = jnp.transpose(A.reshape(N, H, P), (0, 2, 1)).astype(jnp.float32)
    # t-major flatten so each timestep's rows are a contiguous static slice.
    x2d = jnp.transpose(x, (1, 0, 2)).reshape(T * N, D).astype(mxu_dtype)
    Wx_m = Wx.astype(mxu_dtype)
    Whw = jnp.concatenate([Wh, Wattn], axis=0).astype(mxu_dtype)   # (2H, 4H)
    b2 = b.reshape(1, 4 * H).astype(jnp.float32)

    # TODO(synk): for production N on v7x, add a leading "parallel" batch grid
    # axis (BlockSpecs slicing N) so both TensorCores run half the batch; at
    # the toy N here it is pure overhead.
    hn_flat = pl.pallas_call(
        _attn_lstm_kernel,
        out_shape=jax.ShapeDtypeStruct((N, T * H), jnp.float32),
        in_specs=[pl.BlockSpec(memory_space=pltpu.MemorySpace.VMEM)] * 5,
        out_specs=pl.BlockSpec(memory_space=pltpu.MemorySpace.VMEM),
    )(x2d, A_flat, Wx_m, Whw, b2)

    return hn_flat.reshape(N, T, H)


def attention_lstm_reference(x, A, Wx, Wh, Wattn, b):
    """Pure-JAX reference mirroring the PyTorch AttentionLSTM exactly."""
    N, T, D = x.shape
    H = A.shape[1]
    h = jnp.mean(A, axis=(2, 3))
    c = h
    hs = []
    for t in range(T):
        dp = jnp.sum(h[:, :, None, None] * A, axis=1) / math.sqrt(H)   # (N,4,4)
        wt = jax.nn.softmax(dp.reshape(N, -1), axis=1).reshape(N, 4, 4)
        attn = jnp.sum(A * wt[:, None, :, :], axis=(2, 3))             # (N,H)
        a = x[:, t] @ Wx + h @ Wh + attn @ Wattn + b
        i = jax.nn.sigmoid(a[:, :H])
        f = jax.nn.sigmoid(a[:, H:2 * H])
        o = jax.nn.sigmoid(a[:, 2 * H:3 * H])
        g = jnp.tanh(a[:, 3 * H:4 * H])
        c = f * c + i * g
        h = o * jnp.tanh(c)
        hs.append(h)
    return jnp.stack(hs, axis=1)


if __name__ == "__main__":
    key = jax.random.PRNGKey(0)

    # ---- ImageEncoder preprocessing check (uint8 path, in-kernel cast) -----
    k_img, key = jax.random.split(key)
    images_u8 = jax.random.randint(k_img, (2, 3, 64, 64), 0, 256,
                                   dtype=jnp.int32).astype(jnp.uint8)
    feats = jax.block_until_ready(image_encoder_preprocess(images_u8))
    feats_ref = image_encoder_preprocess_reference(images_u8)
    assert feats.shape == (2, 3, 64, 64)
    assert jnp.allclose(feats, feats_ref, atol=1e-4, rtol=1e-5), (
        float(jnp.max(jnp.abs(feats - feats_ref))))

    # ---- ImageEncoder preprocessing check (already-float path, no /255) ----
    images_f = images_u8.astype(jnp.float32) / 255.0
    feats_f = jax.block_until_ready(image_encoder_preprocess(images_f))
    feats_f_ref = image_encoder_preprocess_reference(images_f)
    assert jnp.allclose(feats_f, feats_f_ref, atol=1e-4, rtol=1e-5), (
        float(jnp.max(jnp.abs(feats_f - feats_f_ref))))

    # ---- AttentionLSTM check ------------------------------------------------
    N, T, D, H = 2, 8, 64, 32
    kx, kA, kwx, kwh, kwa = jax.random.split(key, 5)

    x = jax.random.normal(kx, (N, T, D), dtype=jnp.float32)
    A = jax.random.normal(kA, (N, H, 4, 4), dtype=jnp.float32)
    Wx = jax.random.normal(kwx, (D, 4 * H), dtype=jnp.float32) / math.sqrt(D)
    Wh = jax.random.normal(kwh, (H, 4 * H), dtype=jnp.float32) / math.sqrt(H)
    Wattn = jax.random.normal(kwa, (H, 4 * H), dtype=jnp.float32) / math.sqrt(H)
    b = jnp.zeros((4 * H,), dtype=jnp.float32)

    hn_ref = attention_lstm_reference(x, A, Wx, Wh, Wattn, b)

    # f32 MXU path. Tolerance covers the EUP approx-reciprocal in the softmax
    # normalization and the hoisted-matmul summation-order change.
    hn = jax.block_until_ready(attention_lstm_forward(x, A, Wx, Wh, Wattn, b))
    assert hn.shape == (N, T, H)
    assert jnp.allclose(hn, hn_ref, atol=5e-3, rtol=5e-3), (
        float(jnp.max(jnp.abs(hn - hn_ref))))

    # bf16 MXU-operand path (valid on v5e/v6e/v7x): bf16 LHS/RHS, f32
    # accumulate, f32 elementwise. Looser tolerance for bf16 operand rounding.
    hn_bf16 = jax.block_until_ready(
        attention_lstm_forward(x, A, Wx, Wh, Wattn, b, mxu_dtype=jnp.bfloat16))
    assert jnp.allclose(hn_bf16, hn_ref, atol=5e-2, rtol=5e-2), (
        float(jnp.max(jnp.abs(hn_bf16 - hn_ref))))

    print("KERNEL_OK")
</pallas_src>

<mosaic_0001>
module attributes {stable_mosaic.version = 11 : i64} {
  func.func @_image_preprocess_kernel(%arg0: i32, %arg1: i32, %arg2: memref<6x2048xi8, #tpu.memory_space<vmem>>, %arg3: memref<6x1xf32, #tpu.memory_space<vmem>>, %arg4: memref<6x1xf32, #tpu.memory_space<vmem>>, %arg5: memref<6x2048xf32, #tpu.memory_space<vmem>>) attributes {dimension_semantics = [#tpu.dimension_semantics<parallel>, #tpu.dimension_semantics<parallel>], iteration_bounds = array<i64: 1, 2>, scalar_prefetch = 0 : i64, scratch_operands = 0 : i64, tpu.core_type = #tpu.core_type<tc>, window_params = [{transform_indices = @transform_0, window_bounds = array<i64: 6, 2048>}, {transform_indices = @transform_1, window_bounds = array<i64: 6, 1>}, {transform_indices = @transform_2, window_bounds = array<i64: 6, 1>}, {transform_indices = @transform_3, window_bounds = array<i64: 6, 2048>}]} {
    %c0 = arith.constant 0 : index
    %c0_0 = arith.constant 0 : index
    %0 = vector.load %arg2[%c0, %c0_0] : memref<6x2048xi8, #tpu.memory_space<vmem>>, vector<6x2048xi8>
    %1 = arith.uitofp %0 : vector<6x2048xi8> to vector<6x2048xf32>
    %c0_1 = arith.constant 0 : index
    %c0_2 = arith.constant 0 : index
    %2 = vector.load %arg3[%c0_1, %c0_2] : memref<6x1xf32, #tpu.memory_space<vmem>>, vector<6x1xf32>
    %3 = vector.broadcast %2 : vector<6x1xf32> to vector<6x2048xf32>
    %4 = arith.mulf %1, %3 : vector<6x2048xf32>
    %c0_3 = arith.constant 0 : index
    %c0_4 = arith.constant 0 : index
    %5 = vector.load %arg4[%c0_3, %c0_4] : memref<6x1xf32, #tpu.memory_space<vmem>>, vector<6x1xf32>
    %6 = vector.broadcast %5 : vector<6x1xf32> to vector<6x2048xf32>
    %7 = arith.addf %4, %6 : vector<6x2048xf32>
    %c0_5 = arith.constant 0 : index
    %c0_6 = arith.constant 0 : index
    %8 = vector.load %arg5[%c0_5, %c0_6] : memref<6x2048xf32, #tpu.memory_space<vmem>>, vector<6x2048xf32>
    tpu.vector_store %arg5[%c0_5, %c0_6], %7 {strides = array<i32>} : memref<6x2048xf32, #tpu.memory_space<vmem>>, vector<6x2048xf32>,
    return
  }
  func.func @transform_0(%arg0: i32, %arg1: i32) -> (i32, i32) {
    %c0_i32 = arith.constant 0 : i32
    return %arg0, %arg1 : i32, i32
  }
  func.func @transform_1(%arg0: i32, %arg1: i32) -> (i32, i32) {
    %c0_i32 = arith.constant 0 : i32
    %c0_i32_0 = arith.constant 0 : i32
    return %arg0, %c0_i32 : i32, i32
  }
  func.func @transform_2(%arg0: i32, %arg1: i32) -> (i32, i32) {
    %c0_i32 = arith.constant 0 : i32
    %c0_i32_0 = arith.constant 0 : i32
    return %arg0, %c0_i32 : i32, i32
  }
  func.func @transform_3(%arg0: i32, %arg1: i32) -> (i32, i32) {
    %c0_i32 = arith.constant 0 : i32
    return %arg0, %arg1 : i32, i32
  }
}

</mosaic_0001>

<bundles_post_ra>
// kernel: tpu_custom_call.1
= control target key start
LH: loop header
LB: loop body
LE: loop exit
PB: predicated region body
PF: predicated region fallthrough
CT: control target
= control target key end

     0   :  { %8 = vsyncpa [#allocation3], 0  ;;  %s874_s0 = inlined_call_operand.hbm [shape: u8[6,4096], index: 0, kind: input, shape index: {}]   ;;  %s875_s1 = inlined_call_operand.vmem [shape: f32[6,1], index: 1, kind: input, shape index: {}]   ;;  %s876_s2 = inlined_call_operand.vmem [shape: f32[6,1], index: 2, kind: input, shape index: {}]   ;;  %s877_s3 = inlined_call_operand.hbm [shape: f32[6,4096], index: 3, kind: output, shape index: {}]  }
   0x1   :  { %10 = vsyncpa [#allocation3 + $0x1], 0 }
   0x2   :  { %11 = vsyncpa [#allocation4], 0 }
   0x3   :  { %13 = vsyncpa [#allocation4 + $0x1], 0  ;;  %s700_s12 = smov 0   ;;  %s702_s13 = smov 0  }
   0x4   :  { %s704_s14 = smov 0   ;;  %s706_s15 = smov 0  }
   0x5   :  { %s708_s16 = smov 0   ;;  %s710_s17 = smov 0  }
   0x6 LB: > { %s484_s18 = sadd.s32 4294967295, %s675_s17   ;;  %s485_s19 = sadd.s32 4294967294, %s675_s17   ;;  %s675_s17 = sphi %s710_s17, %s19_s17   ;;  %s671_s16 = sphi %s708_s16, %s889_s16   ;;  %s667_s15 = sphi %s706_s15, %s888_s15   ;;  %s663_s14 = sphi %s704_s14, %s887_s14   ;;  %s659_s13 = sphi %s702_s13, %s886_s13   ;;  %s655_s12 = sphi %s700_s12, %s885_s12  }
   0x7   : > { %s28_s20 = sadd.s32 1, %s671_s16  ;;  %s40_s21 = sadd.s32 1, %s663_s14 }
   0x8   : > { %p29_p0 = scmp.ge.s32.totalorder %s28_s20, 2  ;;  %p47_p1 = scmp.ne.s32.totalorder %s663_s14, %s659_s13 }
   0x9   : > { %p48_p2 = scmp.eq.s32.totalorder %s675_s17, 0  ;;  %p53_p3 = scmp.ne.s32.totalorder %s659_s13, %s655_s12 }
   0xa   : > { %s891_s20 = smov (%p29_p0, %s28_s20), 0  ;;  %p54_p5 = scmp.eq.s32.totalorder %s484_s18, 0 }
   0xb   : > { %p741_p4 = por %p48_p2, %p47_p1  ;;  %s36_s23 = ssub.s32 %s671_s16, %s891_s20 }
   0xc   : > { %p131_p6 = scmp.eq.s32.totalorder %s484_s18, 1  ;;  %p38_p7 = scmp.eq.s32.totalorder %s36_s23, 0 }
   0xd   : > { %p747_p8 = por %p54_p5, %p53_p3  ;;  %p137_p10 = scmp.eq.s32.totalorder %s485_s19, 1 }
   0xe   : > { %p751_p9 = por %p131_p6, %p47_p1  ;;  %p515_p13 = scmp.lt.s32.totalorder %s675_s17, 2 }
   0xf   : > { %s756_s26 = scalar_select %p38_p7, %s663_s14, %s40_s21  }
  0x10   : > { %p758_p11 = por %p137_p10, %p53_p3  ;;  %s171_s28 = sand.u32 1, %s663_s14  }
  0x11   : > { %s490_s29 = sshll.u32 %s171_s28, 5  ;;  %s501_s30 = sshll.u32 %s671_s16, 9 }
  0x12   : > { %s881_s27 = scalar_select %p758_p11, 1, 0 }
  0x13   : > { %s183_s6 = scalar_lea.hbm %s874_s0, %s501_s30  ;;  %s175_s7 = scalar_lea.vmem [#allocation2], %s490_s29 }
  0x14   : > { %s185_s8 = sshll.u32 %s175_s7, 4  ;;  %p771_p0 = pnand %p515_p13, %p741_p4  ;;  %s186_s8 = int_to_ptr.vmem [resolvable:$true] %s185_s8 }
  0x15   : > { %p493_p1 = scmp.ge.s32.totalorder %s675_s17, 1  ;;  %p190_p2 = scmp.lt.s32.totalorder %s675_s17, 3 }
  0x16   : > { %s172_s10 = scalar_lea.sflag [#allocation3], %s171_s28  ;;  %p569_p3 = pneg %p771_p0 }
  0x17   : > { %s580_s11 = scalar_lea.vmem %s186_s8, 512  ;;  %s677_s18 = smov [#allocation2]  }
  0x18   : > { %p581_p5 = scmp.ne.s32.totalorder %s186_s8, %s580_s11  ;;  %s585_s19 = sshll.u32 %s677_s18, 4  ;;  %s586_s19 = int_to_ptr.vmem [resolvable:$false] %s585_s19 }
  0x19   : > { %s587_s21 = scalar_lea.vmem %s586_s19, 1024  ;;  %p588_p10 = scmp.lt.s32.totalorder %s186_s8, %s586_s19 }
  0x1a   : > { %p583_p6 = pnand %p581_p5, %p569_p3  ;;  %p589_p12 = scmp.lt.s32.totalorder %s587_s21, %s580_s11 }
  0x1c   : > { %p584_p7 = pneg %p583_p6  ;;  %p590_p4 = por %p589_p12, %p588_p10 }
  0x1e   : > { %p591_p13 = pnand %p590_p4, %p584_p7 }
  0x20   : > { %594 = shalt.err (!%p591_p13)
}
  0x21   : > { %510 = dma.hbm_to_vmem [thread:$0]  (!%p771_p0), %s183_s6, 512, %s186_s8, %s172_s10  }
  0x22   : > { %p191_p11 = pnand %p493_p1, %p190_p2 }
  0x23   : > { %s786_s22 = sand.u32 (!%p191_p11), 1, %s659_s13  }
  0x24   : > { %194 = sbr.rel (%p191_p11) target bundleno = 195 (0xc3), region = 32  ;;  %s494_s23 = sshll.u32 (!%p191_p11), %s786_s22, 5 }
  0x25   : > { %s197_s28 = scalar_lea.sflag (!%p191_p11), [#allocation3], %s786_s22  ;;  %s200_s29 = scalar_lea.vmem (!%p191_p11), [#allocation2], %s494_s23 }
  0x29   : > { %646 = dma.done.wait (%p747_p8), %s197_s28, 512  }
  0x2a   : > { %648 = vsyncadd (%p747_p8), %s197_s28, 4294966784  ;;  %v678_v0 = vmov 0   ;;  %v293_v1 = vld [vmem:[%s875_s1] sm:$0x3f]  ;;  %v242_v4 = vld [vmem:[%s200_s29 + $0x8] sm:$0xff]  ;;  %s495_s24 = sshll.u32 %s786_s22, 7 }
  0x2b   : > { %566 = vset.pattern.permute.xlu0 %v678_v0  ;;  %v315_v2 = vld [vmem:[%s876_s2] sm:$0x3f]  ;;  %v243_v5 = vld [vmem:[%s200_s29 + $0x10] sm:$0xff]  ;;  %v244_v6 = vld [vmem:[%s200_s29 + $0x18] sm:$0xff]  ;;  %v249_v11 = vunpack.c.0.s8 %v242_v4  ;;  %v250_v12 = vunpack.c.1.s8 %v242_v4  ;;  %v251_v13 = vunpack.c.2.s8 %v242_v4  ;;  %v252_v14 = vunpack.c.3.s8 %v242_v4  ;;  %s502_s7 = sshll.u32 %s667_s15, 11  ;;  %s804_s8 = scalar_lea.vmem [#allocation5], %s495_s24 }
  0x2c   : > { %296 = vperm.xlu0 %566, %v293_v1   ;;  %v241_v3 = vld [vmem:[%s200_s29] sm:$0xff]  ;;  %v253_v15 = vunpack.c.0.s8 %v243_v5  ;;  %v254_v16 = vunpack.c.1.s8 %v243_v5  ;;  %v255_v17 = vunpack.c.2.s8 %v243_v5  ;;  %v256_v18 = vunpack.c.3.s8 %v243_v5  ;;  %s370_s9 = sshll.u32 %s804_s8, 4  ;;  %s818_s11 = scalar_lea.hbm %s877_s3, %s502_s7  ;;  %s820_s9 = int_to_ptr.vmem [resolvable:$true] %s370_s9 }
  0x2d   : > { %v245_v7 = vunpack.c.0.s8 %v241_v3  ;;  %v246_v8 = vunpack.c.1.s8 %v241_v3  ;;  %v247_v9 = vunpack.c.2.s8 %v241_v3  ;;  %v248_v10 = vunpack.c.3.s8 %v241_v3  ;;  %s354_s18 = scalar_lea.sflag [#allocation4], %s786_s22  ;;  %s595_s19 = scalar_lea.vmem %s820_s9, 2048 }
  0x2e   : > { %v257_v19 = vunpack.c.0.s8 %v244_v6  ;;  %v258_v20 = vunpack.c.1.s8 %v244_v6  ;;  %v259_v21 = vunpack.c.2.s8 %v244_v6  ;;  %v260_v22 = vunpack.c.3.s8 %v244_v6  ;;  %p596_p8 = scmp.ne.s32.totalorder %s820_s9, %s595_s19  ;;  %s679_s21 = smov [#allocation5]  }
  0x2f   : > { %v261_v23 = vand.u32 255, %v245_v7  ;;  %v262_v24 = vand.u32 255, %v246_v8  ;;  %v263_v25 = vand.u32 255, %v247_v9  ;;  %v264_v26 = vand.u32 255, %v248_v10  ;;  %s599_s23 = sshll.u32 %s679_s21, 4  ;;  %s600_s23 = int_to_ptr.vmem [resolvable:$false] %s599_s23 }
  0x30   : > { %318 = vperm.xlu0 %566, %v315_v2   ;;  %v265_v27 = vand.u32 255, %v249_v11  ;;  %v266_v28 = vand.u32 255, %v250_v12  ;;  %v267_v29 = vand.u32 255, %v251_v13  ;;  %v268_v30 = vand.u32 255, %v252_v14  ;;  %p597_p11 = pnand %p596_p8, %p751_p9  ;;  %s601_s28 = scalar_lea.vmem %s600_s23, 4096 }
  0x31   : > { %v269_v31 = vand.u32 255, %v253_v15  ;;  %v270_v32 = vand.u32 255, %v254_v16  ;;  %v271_v33 = vand.u32 255, %v255_v17  ;;  %v272_v34 = vand.u32 255, %v256_v18  ;;  %p602_p0 = scmp.lt.s32.totalorder %s820_s9, %s600_s23  ;;  %p603_p1 = scmp.lt.s32.totalorder %s601_s28, %s595_s19 }
  0x32   : > { %v273_v35 = vand.u32 255, %v257_v19  ;;  %v274_v36 = vand.u32 255, %v258_v20  ;;  %v275_v37 = vand.u32 255, %v259_v21  ;;  %v276_v38 = vand.u32 255, %v260_v22  ;;  %p598_p12 = pneg %p597_p11 }
  0x33   : > { %v277_v39 = vcvt.s32.f32 %v261_v23  ;;  %v278_v40 = vcvt.s32.f32 %v262_v24  ;;  %v279_v41 = vcvt.s32.f32 %v263_v25  ;;  %v280_v42 = vcvt.s32.f32 %v264_v26  ;;  %p604_p2 = por %p603_p1, %p602_p0 }
  0x34   : > { %v281_v43 = vcvt.s32.f32 %v265_v27  ;;  %v282_v44 = vcvt.s32.f32 %v266_v28  ;;  %v283_v45 = vcvt.s32.f32 %v267_v29  ;;  %v284_v46 = vcvt.s32.f32 %v268_v30 }
  0x35   : > { %v285_v47 = vcvt.s32.f32 %v269_v31  ;;  %v286_v48 = vcvt.s32.f32 %v270_v32  ;;  %v287_v49 = vcvt.s32.f32 %v271_v33  ;;  %v288_v50 = vcvt.s32.f32 %v272_v34  ;;  %p605_p3 = pnand %p604_p2, %p598_p12 }
  0x36   : > { %v289_v52 = vcvt.s32.f32 %v273_v35  ;;  %v290_v53 = vcvt.s32.f32 %v274_v36  ;;  %v291_v54 = vcvt.s32.f32 %v275_v37  ;;  %v292_v55 = vcvt.s32.f32 %v276_v38 }
  0xa7   : > { %v297_v51 = vpop.permute.xlu0 %296 }
  0xa8   : > { %v299_v56 = vmul.f32 %v297_v51, %v277_v39  ;;  %v300_v57 = vmul.f32 %v297_v51, %v278_v40  ;;  %v301_v58 = vmul.f32 %v297_v51, %v279_v41  ;;  %v302_v59 = vmul.f32 %v297_v51, %v280_v42 }
  0xa9   : > { %v303_v60 = vmul.f32 %v297_v51, %v281_v43  ;;  %v304_v61 = vmul.f32 %v297_v51, %v282_v44  ;;  %v305_v62 = vmul.f32 %v297_v51, %v283_v45  ;;  %v306_v63 = vmul.f32 %v297_v51, %v284_v46 }
  0xaa   : > { %v307_v0 = vmul.f32 %v297_v51, %v285_v47  ;;  %v308_v1 = vmul.f32 %v297_v51, %v286_v48  ;;  %v309_v2 = vmul.f32 %v297_v51, %v287_v49  ;;  %v310_v3 = vmul.f32 %v297_v51, %v288_v50 }
  0xab   : > { %v319_v4 = vpop.permute.xlu0 %318  ;;  %v311_v5 = vmul.f32 %v297_v51, %v289_v52  ;;  %v312_v6 = vmul.f32 %v297_v51, %v290_v53  ;;  %v313_v7 = vmul.f32 %v297_v51, %v291_v54  ;;  %v314_v8 = vmul.f32 %v297_v51, %v292_v55 }
  0xac   : > { %v321_v9 = vadd.f32 %v319_v4, %v299_v56  ;;  %v322_v10 = vadd.f32 %v319_v4, %v300_v57  ;;  %v323_v11 = vadd.f32 %v319_v4, %v301_v58  ;;  %v324_v12 = vadd.f32 %v319_v4, %v302_v59 }
  0xad   : > { %v325_v13 = vadd.f32 %v319_v4, %v303_v60  ;;  %v326_v14 = vadd.f32 %v319_v4, %v304_v61  ;;  %v327_v15 = vadd.f32 %v319_v4, %v305_v62  ;;  %v328_v16 = vadd.f32 %v319_v4, %v306_v63 }
  0xae   : > { %v329_v17 = vadd.f32 %v319_v4, %v307_v0  ;;  %v330_v18 = vadd.f32 %v319_v4, %v308_v1  ;;  %v331_v19 = vadd.f32 %v319_v4, %v309_v2  ;;  %v332_v20 = vadd.f32 %v319_v4, %v310_v3  ;;  %337 = vst [vmem:[%s804_s8] sm:$0x3f] %v321_v9 }
  0xaf   : > { %338 = vst [vmem:[%s804_s8 + $0x8] sm:$0x3f] %v322_v10  ;;  %339 = vst [vmem:[%s804_s8 + $0x10] sm:$0x3f] %v323_v11  ;;  %v333_v21 = vadd.f32 %v319_v4, %v311_v5  ;;  %v334_v22 = vadd.f32 %v319_v4, %v312_v6  ;;  %v335_v23 = vadd.f32 %v319_v4, %v313_v7 }
  0xb0   : > { %340 = vst [vmem:[%s804_s8 + $0x18] sm:$0x3f] %v324_v12  ;;  %v336_v24 = vadd.f32 %v319_v4, %v314_v8  ;;  %341 = vst [vmem:[%s804_s8 + $0x20] sm:$0x3f] %v325_v13 }
  0xb1   : > { %342 = vst [vmem:[%s804_s8 + $0x28] sm:$0x3f] %v326_v14  ;;  %343 = vst [vmem:[%s804_s8 + $0x30] sm:$0x3f] %v327_v15 }
  0xb2   : > { %344 = vst [vmem:[%s804_s8 + $0x38] sm:$0x3f] %v328_v16  ;;  %345 = vst [vmem:[%s804_s8 + $0x40] sm:$0x3f] %v329_v17 }
  0xb3   : > { %346 = vst [vmem:[%s804_s8 + $0x48] sm:$0x3f] %v330_v18  ;;  %347 = vst [vmem:[%s804_s8 + $0x50] sm:$0x3f] %v331_v19 }
  0xb4   : > { %348 = vst [vmem:[%s804_s8 + $0x58] sm:$0x3f] %v332_v20  ;;  %349 = vst [vmem:[%s804_s8 + $0x60] sm:$0x3f] %v333_v21 }
  0xb5   : > { %350 = vst [vmem:[%s804_s8 + $0x68] sm:$0x3f] %v334_v22  ;;  %351 = vst [vmem:[%s804_s8 + $0x70] sm:$0x3f] %v335_v23 }
  0xb6   : > { %352 = vst [vmem:[%s804_s8 + $0x78] sm:$0x3f] %v336_v24 }
  0xb7   : > { %608 = shalt.err (!%p605_p3)
}
  0xb8   : > { %s609_s29 = scalar_lea.hbm %s818_s11, 2048  ;;  %s613_s4 = scalar_lea.hbm %s877_s3, 4096 }
  0xb9   : > { %p610_p5 = scmp.ne.s32.totalorder %s818_s11, %s609_s29  ;;  %p614_p10 = scmp.lt.s32.totalorder %s818_s11, %s877_s3 }
  0xba   : > { %p615_p4 = scmp.lt.s32.totalorder %s613_s4, %s609_s29 }
  0xbb   : > { %p611_p6 = pnand %p610_p5, %p751_p9 }
  0xbc   : > { %p616_p13 = por %p615_p4, %p614_p10 }
  0xbd   : > { %p612_p7 = pneg %p611_p6 }
  0xbf   : > { %p617_p8 = pnand %p616_p13, %p612_p7 }
  0xc1   : > { %620 = shalt.err (!%p617_p8)
}
  0xc2   : > { %505 = dma.vmem_to_hbm [thread:$0]  (%p751_p9), %s820_s9, 2048, %s818_s11, %s354_s18  }
  0xc3 PF: > { %s382_s24 = sand.u32 1, %s655_s12   ;;  %p883_p11 = scmp.ne.s32.totalorder %s881_s27, 0 }
  0xc4   : > { %p884_p12 = scmp.ge.s32.totalorder %s675_s17, 2  ;;  %s383_s7 = scalar_lea.sflag [#allocation4], %s382_s24 }
  0xc6   : > { %p512_p0 = pnand %p884_p12, %p883_p11 }
  0xc8   : > { %p513_p1 = pneg %p512_p0 }
  0xca   : > { %650 = dma.done.wait (%p513_p1), %s383_s7, 2048  }
  0xcb   : > { %652 = vsyncadd (%p513_p1), %s383_s7, 4294965248  ;;  %s19_s17 = sadd.s32 1, %s675_s17   ;;  %s885_s12 = smov %s659_s13 }
  0xcc   : > { %p16_p2 = scmp.ge.s32.totalorder %s19_s17, 4   ;;  %s886_s13 = smov %s663_s14 }
  0xcd   : > { %s887_s14 = smov %s756_s26  ;;  %s888_s15 = smov %s671_s16 }
  0xce   : > { %s889_s16 = smov %s891_s20  ;;  %18 = sbr.rel (!%p16_p2) target bundleno = 6 (0x6), region = 83 }
  0xd3   :  { %388 = vsyncpa [#allocation3], 1 }
  0xd4   :  { %390 = vsyncpa [#allocation3 + $0x1], 1 }
  0xd5   :  { %391 = vsyncpa [#allocation4], 1 }
  0xd6   :  { %393 = vsyncpa [#allocation4 + $0x1], 1 }

</bundles_post_ra>
